<compile_context>
chip_gen: v7x
topology: tpu7x:2x2x1
jax: 0.10.0
libtpu: 0.0.40
codegen_flags: <defaults>
</compile_context>

<pallas_src>
import math
import jax
import jax.numpy as jnp
from jax import lax
from jax.experimental import pallas as pl
from jax.experimental.pallas import tpu as pltpu

BN_EPS = 1e-5
LANE = 128


def _round_up(n, m):
    return ((n + m - 1) // m) * m


# ---------------------------------------------------------------------------
# Fused Pallas kernel: all MLP layers + (optional) residual in one call
# ---------------------------------------------------------------------------
def _make_fused_kernel(n_layers, residual_mode, n_rows, in_dim, pad_in):
    """residual_mode: 'none' | 'identity' | 'linear'.

    Ref order (inputs..., outputs..., scratch...):
      x (N,in_dim) f32 | w_i (Pin_i,Pout_i) bf16 ×L | gamma_i (1,Pout_i) f32 ×L |
      beta_i (1,Pout_i) f32 ×L | [res_w bf16, res_b f32] | out (N,PoutL) f32 |
      [x_pad scratch (N,Pin0) f32]
    """

    def kernel(*refs):
        idx = 0
        x_ref = refs[idx]; idx += 1
        w_refs = refs[idx:idx + n_layers]; idx += n_layers
        g_refs = refs[idx:idx + n_layers]; idx += n_layers
        bt_refs = refs[idx:idx + n_layers]; idx += n_layers
        if residual_mode == "linear":
            rw_ref, rb_ref = refs[idx], refs[idx + 1]; idx += 2
        o_ref = refs[idx]; idx += 1

        # Pad x to a lane-dense width inside the kernel (no separate XLA pad op).
        if pad_in:
            xpad_ref = refs[idx]; idx += 1
            xpad_ref[...] = jnp.zeros_like(xpad_ref)
            xpad_ref[:, :in_dim] = x_ref[...]          # one masked partial store
            x0 = xpad_ref[...]                         # (N, Pin0), zero padded cols
        else:
            x0 = x_ref[...]

        # MXU column-sum LHS (hoisted once). 8 rows keeps the matmul
        # sublane-aligned; rows are identical so we slice row 0 afterwards.
        ones_over_n = jnp.full((8, n_rows), 1.0 / n_rows, jnp.float32)

        h = x0
        # Static unroll: n_layers is small & fixed; per-layer padded widths differ.
        for i in range(n_layers):
            # Linear (bias dropped: BN removes any per-feature constant).
            z = jnp.dot(h.astype(jnp.bfloat16), w_refs[i][...],
                        preferred_element_type=jnp.float32)         # (N, Pout_i) f32
            # BatchNorm1d training-mode stats via MXU column sums (no XLU reduce).
            mean = jnp.dot(ones_over_n, z,
                           preferred_element_type=jnp.float32)[0:1, :]
            ez2 = jnp.dot(ones_over_n, z * z,
                          preferred_element_type=jnp.float32)[0:1, :]
            var = ez2 - mean * mean                    # biased variance
            # Fold BN into a single scale/shift pass (gamma padded with 0 keeps
            # padded feature columns exactly zero); fuse with ReLU.
            scale = g_refs[i][...] * lax.rsqrt(var + BN_EPS)
            shift = bt_refs[i][...] - mean * scale
            h = jnp.maximum(z * scale + shift, 0.0)    # dropout p=0.0 -> identity

        if residual_mode == "identity":
            h = h + x0
        elif residual_mode == "linear":
            res = jnp.dot(x0.astype(jnp.bfloat16), rw_ref[...],
                          preferred_element_type=jnp.float32)
            h = h + res + rb_ref[...]

        o_ref[...] = h.astype(o_ref.dtype)

    return kernel


# ---------------------------------------------------------------------------
# Parameter construction (mirrors KernelMLP.__init__, per-layer lane padding)
# ---------------------------------------------------------------------------
def _init_linear(key, in_dim, out_dim):
    # torch-style uniform(-1/sqrt(in_dim), 1/sqrt(in_dim)); W pre-transposed to (in, out).
    kw, kb = jax.random.split(key)
    bound = 1.0 / math.sqrt(in_dim)
    w = jax.random.uniform(kw, (in_dim, out_dim), jnp.float32, -bound, bound)
    b = jax.random.uniform(kb, (1, out_dim), jnp.float32, -bound, bound)
    return w, b


def init_kernel_mlp(key, in_dim, out_dim, n_layers, scale, residual=False):
    hidden_dim = int(scale * max(in_dim, out_dim))
    dims = [in_dim] + [hidden_dim] * (n_layers - 1) + [out_dim]
    pdims = [_round_up(d, LANE) for d in dims]         # per-layer padded widths

    ws, gammas, betas = [], [], []
    for i in range(n_layers):
        key, sub = jax.random.split(key)
        w, _b = _init_linear(sub, dims[i], dims[i + 1])   # linear bias is a no-op pre-BN
        w_p = (jnp.zeros((pdims[i], pdims[i + 1]), jnp.float32)
               .at[: dims[i], : dims[i + 1]].set(w)
               .astype(jnp.bfloat16))                     # bf16 for the MXU
        # gamma padded with 0 so padded feature columns stay exactly zero.
        g_p = jnp.zeros((1, pdims[i + 1]), jnp.float32).at[:, : dims[i + 1]].set(1.0)
        b_p = jnp.zeros((1, pdims[i + 1]), jnp.float32)   # beta init = 0 (padded too)
        ws.append(w_p); gammas.append(g_p); betas.append(b_p)

    params = {
        "ws": ws, "gammas": gammas, "betas": betas,
        "dims": dims, "pdims": pdims,
        "n_layers": n_layers, "in_dim": in_dim, "out_dim": out_dim,
    }
    if residual:
        if in_dim == out_dim:
            params["residual_mode"] = "identity"          # nn.Sequential()
        else:
            params["residual_mode"] = "linear"
            key, sub = jax.random.split(key)
            rw, rb = _init_linear(sub, in_dim, out_dim)
            params["res_w"] = (jnp.zeros((pdims[0], pdims[-1]), jnp.float32)
                               .at[:in_dim, :out_dim].set(rw)
                               .astype(jnp.bfloat16))
            params["res_b"] = (jnp.zeros((1, pdims[-1]), jnp.float32)
                               .at[:, :out_dim].set(rb))
    else:
        params["residual_mode"] = "none"
    return params


# ---------------------------------------------------------------------------
# Forward: one pallas_call for the whole module
# ---------------------------------------------------------------------------
def kernel_mlp_forward(params, x):
    n, in_dim = x.shape
    assert in_dim == params["in_dim"]
    L = params["n_layers"]
    pdims = params["pdims"]
    mode = params["residual_mode"]
    p_out = pdims[-1]
    pad_in = pdims[0] != in_dim

    inputs = [x] + list(params["ws"]) + list(params["gammas"]) + list(params["betas"])
    if mode == "linear":
        inputs += [params["res_w"], params["res_b"]]

    scratch_shapes = []
    if pad_in:
        scratch_shapes.append(pltpu.VMEM((n, pdims[0]), jnp.float32))

    # Advisory cost estimate.
    flops = 0
    for i in range(L):
        flops += 2 * n * pdims[i] * pdims[i + 1]          # layer matmul
        flops += 2 * 2 * 8 * n * pdims[i + 1]             # MXU column sums
        flops += 6 * n * pdims[i + 1]                     # scale/shift/relu
    if mode == "linear":
        flops += 2 * n * pdims[0] * p_out + 2 * n * p_out
    in_bytes = sum(int(a.size) * a.dtype.itemsize for a in inputs)
    out_bytes = 4 * n * p_out
    cost = pl.CostEstimate(flops=int(flops),
                           transcendentals=int(sum(pdims[1:])),
                           bytes_accessed=int(in_bytes + out_bytes))

    # VMEM limit sized from the actual footprint (+headroom), capped at 64 MiB
    # (smallest physical VMEM across generations) — beyond that, tile (see TODOs).
    p_max = max(pdims)
    scratch_bytes = 4 * n * pdims[0] if pad_in else 0
    vmem_limit = int(1.5 * (in_bytes + out_bytes + scratch_bytes + 4 * 4 * n * p_max))
    vmem_limit = min(max(vmem_limit, 8 << 20), 64 << 20)

    # Gridless call: whole arrays resident in VMEM (no index_map footgun).
    vmem_spec = pl.BlockSpec(memory_space=pltpu.MemorySpace.VMEM)

    out_p = pl.pallas_call(
        _make_fused_kernel(L, mode, n, in_dim, pad_in),
        out_shape=jax.ShapeDtypeStruct((n, p_out), jnp.float32),
        in_specs=[vmem_spec] * len(inputs),
        out_specs=vmem_spec,
        scratch_shapes=tuple(scratch_shapes),
        compiler_params=pltpu.CompilerParams(vmem_limit_bytes=vmem_limit),
        cost_estimate=cost,
    )(*inputs)

    return out_p[:, : params["out_dim"]]


# ---------------------------------------------------------------------------
# Pure-JAX references for correctness checks
# ---------------------------------------------------------------------------
def _reference_forward(params, x, emulate_bf16=True):
    """emulate_bf16=True mirrors the kernel's bf16 MXU inputs (f32 accumulate);
    False gives the original torch f32-matmul semantics."""
    dims = params["dims"]

    def mm(a, w):
        if emulate_bf16:
            a = a.astype(jnp.bfloat16).astype(jnp.float32)
        return a @ w

    h = x
    for i in range(params["n_layers"]):
        w = params["ws"][i][: dims[i], : dims[i + 1]].astype(jnp.float32)
        g = params["gammas"][i][:, : dims[i + 1]]
        b = params["betas"][i][:, : dims[i + 1]]
        z = mm(h, w)
        mean = jnp.mean(z, axis=0, keepdims=True)
        var = jnp.mean((z - mean) ** 2, axis=0, keepdims=True)
        z = (z - mean) * lax.rsqrt(var + BN_EPS) * g + b
        h = jnp.maximum(z, 0.0)
    mode = params["residual_mode"]
    if mode == "identity":
        h = h + x
    elif mode == "linear":
        rw = params["res_w"][: params["in_dim"], : params["out_dim"]].astype(jnp.float32)
        rb = params["res_b"][:, : params["out_dim"]]
        h = h + mm(x, rw) + rb
    return h


# ---------------------------------------------------------------------------
if __name__ == "__main__":
    key = jax.random.PRNGKey(0)

    # Small shapes consistent with the module: node features (N, in_dim).
    configs = [
        # (N, in_dim, out_dim, n_layers, scale, residual)
        (64, 16, 8, 3, 2.0, True),    # residual -> linear projection path
        (64, 16, 16, 2, 2.0, True),   # residual -> identity path
        (64, 16, 8, 3, 2.0, False),   # no residual
    ]
    for cfg_idx, (N, in_dim, out_dim, n_layers, scale, residual) in enumerate(configs):
        k_param, k_x = jax.random.split(jax.random.fold_in(key, cfg_idx))
        params = init_kernel_mlp(k_param, in_dim, out_dim, n_layers, scale, residual)
        x = jax.random.normal(k_x, (N, in_dim), jnp.float32)

        out = jax.block_until_ready(kernel_mlp_forward(params, x))
        assert out.shape == (N, out_dim)
        assert bool(jnp.all(jnp.isfinite(out)))

        # Tight check vs a reference mirroring the kernel's bf16 matmul inputs.
        ref = _reference_forward(params, x, emulate_bf16=True)
        err = float(jnp.max(jnp.abs(out - ref)))
        assert jnp.allclose(out, ref, rtol=2e-3, atol=2e-3), (cfg_idx, err)

        # Coarse sanity check vs full-f32 (original torch-semantics) math;
        # tolerance loosened for the intentional bf16 MXU inputs.
        ref32 = _reference_forward(params, x, emulate_bf16=False)
        err32 = float(jnp.max(jnp.abs(out - ref32)))
        assert jnp.allclose(out, ref32, rtol=2e-1, atol=2e-1), (cfg_idx, err32)

    print("KERNEL_OK")
</pallas_src>

<mosaic_0001>
module attributes {stable_mosaic.version = 11 : i64} {
  func.func @kernel(%arg0: memref<64x16xf32, #tpu.memory_space<vmem>>, %arg1: memref<128x128xbf16, #tpu.memory_space<vmem>>, %arg2: memref<128x128xbf16, #tpu.memory_space<vmem>>, %arg3: memref<128x128xbf16, #tpu.memory_space<vmem>>, %arg4: memref<1x128xf32, #tpu.memory_space<vmem>>, %arg5: memref<1x128xf32, #tpu.memory_space<vmem>>, %arg6: memref<1x128xf32, #tpu.memory_space<vmem>>, %arg7: memref<1x128xf32, #tpu.memory_space<vmem>>, %arg8: memref<1x128xf32, #tpu.memory_space<vmem>>, %arg9: memref<1x128xf32, #tpu.memory_space<vmem>>, %arg10: memref<128x128xbf16, #tpu.memory_space<vmem>>, %arg11: memref<1x128xf32, #tpu.memory_space<vmem>>, %arg12: memref<64x128xf32, #tpu.memory_space<vmem>>, %arg13: memref<64x128xf32, #tpu.memory_space<vmem>>) attributes {dimension_semantics = [], scalar_prefetch = 0 : i64, scratch_operands = 1 : i64, tpu.core_type = #tpu.core_type<tc>} {
    %cst = arith.constant 0.000000e+00 : f32
    %0 = vector.broadcast %cst : f32 to vector<64x128xf32>
    %c0 = arith.constant 0 : index
    %c0_0 = arith.constant 0 : index
    %1 = vector.load %arg13[%c0, %c0_0] : memref<64x128xf32, #tpu.memory_space<vmem>>, vector<64x128xf32>
    tpu.vector_store %arg13[%c0, %c0_0], %0 {strides = array<i32>} : memref<64x128xf32, #tpu.memory_space<vmem>>, vector<64x128xf32>,
    %c0_1 = arith.constant 0 : index
    %c0_2 = arith.constant 0 : index
    %2 = vector.load %arg0[%c0_1, %c0_2] : memref<64x16xf32, #tpu.memory_space<vmem>>, vector<64x16xf32>
    %c0_3 = arith.constant 0 : index
    %c0_4 = arith.constant 0 : index
    %3 = vector.load %arg13[%c0_3, %c0_4] : memref<64x128xf32, #tpu.memory_space<vmem>>, vector<64x16xf32>
    tpu.vector_store %arg13[%c0_3, %c0_4], %2 {strides = array<i32>} : memref<64x128xf32, #tpu.memory_space<vmem>>, vector<64x16xf32>,
    %c0_5 = arith.constant 0 : index
    %c0_6 = arith.constant 0 : index
    %4 = vector.load %arg13[%c0_5, %c0_6] : memref<64x128xf32, #tpu.memory_space<vmem>>, vector<64x128xf32>
    %cst_7 = arith.constant 1.562500e-02 : f32
    %5 = vector.broadcast %cst_7 : f32 to vector<8x64xf32>
    %6 = arith.truncf %4 : vector<64x128xf32> to vector<64x128xbf16>
    %c0_8 = arith.constant 0 : index
    %c0_9 = arith.constant 0 : index
    %7 = vector.load %arg1[%c0_8, %c0_9] : memref<128x128xbf16, #tpu.memory_space<vmem>>, vector<128x128xbf16>
    %cst_10 = arith.constant dense<0.000000e+00> : vector<64x128xf32>
    %8 = tpu.matmul %6, %7, %cst_10 {dimension_numbers = #tpu.dot_dimension_numbers<[1], [0], [0], [1], [0, 0, 1, 1], [], []>} : vector<64x128xbf16>, vector<128x128xbf16>, vector<64x128xf32> -> vector<64x128xf32>
    %cst_11 = arith.constant dense<0.000000e+00> : vector<8x128xf32>
    %9 = tpu.matmul %5, %8, %cst_11 {dimension_numbers = #tpu.dot_dimension_numbers<[1], [0], [0], [1], [0, 0, 1, 1], [], []>} : vector<8x64xf32>, vector<64x128xf32>, vector<8x128xf32> -> vector<8x128xf32>
    %10 = vector.extract_strided_slice %9 {offsets = [0, 0], sizes = [1, 128], strides = [1, 1]} : vector<8x128xf32> to vector<1x128xf32>
    %11 = arith.mulf %8, %8 : vector<64x128xf32>
    %cst_12 = arith.constant dense<0.000000e+00> : vector<8x128xf32>
    %12 = tpu.matmul %5, %11, %cst_12 {dimension_numbers = #tpu.dot_dimension_numbers<[1], [0], [0], [1], [0, 0, 1, 1], [], []>} : vector<8x64xf32>, vector<64x128xf32>, vector<8x128xf32> -> vector<8x128xf32>
    %13 = vector.extract_strided_slice %12 {offsets = [0, 0], sizes = [1, 128], strides = [1, 1]} : vector<8x128xf32> to vector<1x128xf32>
    %14 = arith.mulf %10, %10 : vector<1x128xf32>
    %15 = arith.subf %13, %14 : vector<1x128xf32>
    %c0_13 = arith.constant 0 : index
    %c0_14 = arith.constant 0 : index
    %16 = vector.load %arg4[%c0_13, %c0_14] : memref<1x128xf32, #tpu.memory_space<vmem>>, vector<1x128xf32>
    %cst_15 = arith.constant 9.99999974E-6 : f32
    %17 = vector.broadcast %cst_15 : f32 to vector<1x128xf32>
    %18 = arith.addf %15, %17 : vector<1x128xf32>
    %19 = math.rsqrt %18 : vector<1x128xf32>
    %20 = arith.mulf %16, %19 : vector<1x128xf32>
    %c0_16 = arith.constant 0 : index
    %c0_17 = arith.constant 0 : index
    %21 = vector.load %arg7[%c0_16, %c0_17] : memref<1x128xf32, #tpu.memory_space<vmem>>, vector<1x128xf32>
    %22 = arith.mulf %10, %20 : vector<1x128xf32>
    %23 = arith.subf %21, %22 : vector<1x128xf32>
    %24 = vector.broadcast %20 : vector<1x128xf32> to vector<64x128xf32>
    %25 = arith.mulf %8, %24 : vector<64x128xf32>
    %26 = vector.broadcast %23 : vector<1x128xf32> to vector<64x128xf32>
    %27 = arith.addf %25, %26 : vector<64x128xf32>
    %cst_18 = arith.constant 0.000000e+00 : f32
    %28 = vector.broadcast %cst_18 : f32 to vector<64x128xf32>
    %29 = arith.maximumf %27, %28 : vector<64x128xf32>
    %30 = arith.truncf %29 : vector<64x128xf32> to vector<64x128xbf16>
    %c0_19 = arith.constant 0 : index
    %c0_20 = arith.constant 0 : index
    %31 = vector.load %arg2[%c0_19, %c0_20] : memref<128x128xbf16, #tpu.memory_space<vmem>>, vector<128x128xbf16>
    %cst_21 = arith.constant dense<0.000000e+00> : vector<64x128xf32>
    %32 = tpu.matmul %30, %31, %cst_21 {dimension_numbers = #tpu.dot_dimension_numbers<[1], [0], [0], [1], [0, 0, 1, 1], [], []>} : vector<64x128xbf16>, vector<128x128xbf16>, vector<64x128xf32> -> vector<64x128xf32>
    %cst_22 = arith.constant dense<0.000000e+00> : vector<8x128xf32>
    %33 = tpu.matmul %5, %32, %cst_22 {dimension_numbers = #tpu.dot_dimension_numbers<[1], [0], [0], [1], [0, 0, 1, 1], [], []>} : vector<8x64xf32>, vector<64x128xf32>, vector<8x128xf32> -> vector<8x128xf32>
    %34 = vector.extract_strided_slice %33 {offsets = [0, 0], sizes = [1, 128], strides = [1, 1]} : vector<8x128xf32> to vector<1x128xf32>
    %35 = arith.mulf %32, %32 : vector<64x128xf32>
    %cst_23 = arith.constant dense<0.000000e+00> : vector<8x128xf32>
    %36 = tpu.matmul %5, %35, %cst_23 {dimension_numbers = #tpu.dot_dimension_numbers<[1], [0], [0], [1], [0, 0, 1, 1], [], []>} : vector<8x64xf32>, vector<64x128xf32>, vector<8x128xf32> -> vector<8x128xf32>
    %37 = vector.extract_strided_slice %36 {offsets = [0, 0], sizes = [1, 128], strides = [1, 1]} : vector<8x128xf32> to vector<1x128xf32>
    %38 = arith.mulf %34, %34 : vector<1x128xf32>
    %39 = arith.subf %37, %38 : vector<1x128xf32>
    %c0_24 = arith.constant 0 : index
    %c0_25 = arith.constant 0 : index
    %40 = vector.load %arg5[%c0_24, %c0_25] : memref<1x128xf32, #tpu.memory_space<vmem>>, vector<1x128xf32>
    %cst_26 = arith.constant 9.99999974E-6 : f32
    %41 = vector.broadcast %cst_26 : f32 to vector<1x128xf32>
    %42 = arith.addf %39, %41 : vector<1x128xf32>
    %43 = math.rsqrt %42 : vector<1x128xf32>
    %44 = arith.mulf %40, %43 : vector<1x128xf32>
    %c0_27 = arith.constant 0 : index
    %c0_28 = arith.constant 0 : index
    %45 = vector.load %arg8[%c0_27, %c0_28] : memref<1x128xf32, #tpu.memory_space<vmem>>, vector<1x128xf32>
    %46 = arith.mulf %34, %44 : vector<1x128xf32>
    %47 = arith.subf %45, %46 : vector<1x128xf32>
    %48 = vector.broadcast %44 : vector<1x128xf32> to vector<64x128xf32>
    %49 = arith.mulf %32, %48 : vector<64x128xf32>
    %50 = vector.broadcast %47 : vector<1x128xf32> to vector<64x128xf32>
    %51 = arith.addf %49, %50 : vector<64x128xf32>
    %cst_29 = arith.constant 0.000000e+00 : f32
    %52 = vector.broadcast %cst_29 : f32 to vector<64x128xf32>
    %53 = arith.maximumf %51, %52 : vector<64x128xf32>
    %54 = arith.truncf %53 : vector<64x128xf32> to vector<64x128xbf16>
    %c0_30 = arith.constant 0 : index
    %c0_31 = arith.constant 0 : index
    %55 = vector.load %arg3[%c0_30, %c0_31] : memref<128x128xbf16, #tpu.memory_space<vmem>>, vector<128x128xbf16>
    %cst_32 = arith.constant dense<0.000000e+00> : vector<64x128xf32>
    %56 = tpu.matmul %54, %55, %cst_32 {dimension_numbers = #tpu.dot_dimension_numbers<[1], [0], [0], [1], [0, 0, 1, 1], [], []>} : vector<64x128xbf16>, vector<128x128xbf16>, vector<64x128xf32> -> vector<64x128xf32>
    %cst_33 = arith.constant dense<0.000000e+00> : vector<8x128xf32>
    %57 = tpu.matmul %5, %56, %cst_33 {dimension_numbers = #tpu.dot_dimension_numbers<[1], [0], [0], [1], [0, 0, 1, 1], [], []>} : vector<8x64xf32>, vector<64x128xf32>, vector<8x128xf32> -> vector<8x128xf32>
    %58 = vector.extract_strided_slice %57 {offsets = [0, 0], sizes = [1, 128], strides = [1, 1]} : vector<8x128xf32> to vector<1x128xf32>
    %59 = arith.mulf %56, %56 : vector<64x128xf32>
    %cst_34 = arith.constant dense<0.000000e+00> : vector<8x128xf32>
    %60 = tpu.matmul %5, %59, %cst_34 {dimension_numbers = #tpu.dot_dimension_numbers<[1], [0], [0], [1], [0, 0, 1, 1], [], []>} : vector<8x64xf32>, vector<64x128xf32>, vector<8x128xf32> -> vector<8x128xf32>
    %61 = vector.extract_strided_slice %60 {offsets = [0, 0], sizes = [1, 128], strides = [1, 1]} : vector<8x128xf32> to vector<1x128xf32>
    %62 = arith.mulf %58, %58 : vector<1x128xf32>
    %63 = arith.subf %61, %62 : vector<1x128xf32>
    %c0_35 = arith.constant 0 : index
    %c0_36 = arith.constant 0 : index
    %64 = vector.load %arg6[%c0_35, %c0_36] : memref<1x128xf32, #tpu.memory_space<vmem>>, vector<1x128xf32>
    %cst_37 = arith.constant 9.99999974E-6 : f32
    %65 = vector.broadcast %cst_37 : f32 to vector<1x128xf32>
    %66 = arith.addf %63, %65 : vector<1x128xf32>
    %67 = math.rsqrt %66 : vector<1x128xf32>
    %68 = arith.mulf %64, %67 : vector<1x128xf32>
    %c0_38 = arith.constant 0 : index
    %c0_39 = arith.constant 0 : index
    %69 = vector.load %arg9[%c0_38, %c0_39] : memref<1x128xf32, #tpu.memory_space<vmem>>, vector<1x128xf32>
    %70 = arith.mulf %58, %68 : vector<1x128xf32>
    %71 = arith.subf %69, %70 : vector<1x128xf32>
    %72 = vector.broadcast %68 : vector<1x128xf32> to vector<64x128xf32>
    %73 = arith.mulf %56, %72 : vector<64x128xf32>
    %74 = vector.broadcast %71 : vector<1x128xf32> to vector<64x128xf32>
    %75 = arith.addf %73, %74 : vector<64x128xf32>
    %cst_40 = arith.constant 0.000000e+00 : f32
    %76 = vector.broadcast %cst_40 : f32 to vector<64x128xf32>
    %77 = arith.maximumf %75, %76 : vector<64x128xf32>
    %78 = arith.truncf %4 : vector<64x128xf32> to vector<64x128xbf16>
    %c0_41 = arith.constant 0 : index
    %c0_42 = arith.constant 0 : index
    %79 = vector.load %arg10[%c0_41, %c0_42] : memref<128x128xbf16, #tpu.memory_space<vmem>>, vector<128x128xbf16>
    %cst_43 = arith.constant dense<0.000000e+00> : vector<64x128xf32>
    %80 = tpu.matmul %78, %79, %cst_43 {dimension_numbers = #tpu.dot_dimension_numbers<[1], [0], [0], [1], [0, 0, 1, 1], [], []>} : vector<64x128xbf16>, vector<128x128xbf16>, vector<64x128xf32> -> vector<64x128xf32>
    %81 = arith.addf %77, %80 : vector<64x128xf32>
    %c0_44 = arith.constant 0 : index
    %c0_45 = arith.constant 0 : index
    %82 = vector.load %arg11[%c0_44, %c0_45] : memref<1x128xf32, #tpu.memory_space<vmem>>, vector<1x128xf32>
    %83 = vector.broadcast %82 : vector<1x128xf32> to vector<64x128xf32>
    %84 = arith.addf %81, %83 : vector<64x128xf32>
    %c0_46 = arith.constant 0 : index
    %c0_47 = arith.constant 0 : index
    %85 = vector.load %arg12[%c0_46, %c0_47] : memref<64x128xf32, #tpu.memory_space<vmem>>, vector<64x128xf32>
    tpu.vector_store %arg12[%c0_46, %c0_47], %84 {strides = array<i32>} : memref<64x128xf32, #tpu.memory_space<vmem>>, vector<64x128xf32>,
    return
  }
}

</mosaic_0001>

<bundles_post_ra>
// kernel: tpu_custom_call.1
= control target key start
LH: loop header
LB: loop body
LE: loop exit
PB: predicated region body
PF: predicated region fallthrough
CT: control target
= control target key end

     0   :  { %17 = vsyncpa [#allocation4], 0  ;;  %s2256_s0 = inlined_call_operand.vmem [shape: f32[64,16], index: 0, kind: input, shape index: {}]   ;;  %s2257_s1 = inlined_call_operand.vmem [shape: bf16[128,128], index: 1, kind: input, shape index: {}]   ;;  %s2258_s2 = inlined_call_operand.hbm [shape: bf16[128,128], index: 2, kind: input, shape index: {}]   ;;  %s2259_s3 = inlined_call_operand.hbm [shape: bf16[128,128], index: 3, kind: input, shape index: {}]   ;;  %s2260_s4 = inlined_call_operand.vmem [shape: f32[1,128], index: 4, kind: input, shape index: {}]   ;;  %s2261_s5 = inlined_call_operand.vmem [shape: f32[1,128], index: 5, kind: input, shape index: {}]   ;;  %s2262_s6 = inlined_call_operand.vmem [shape: f32[1,128], index: 6, kind: input, shape index: {}]   ;;  %s2263_s7 = inlined_call_operand.vmem [shape: f32[1,128], index: 7, kind: input, shape index: {}]   ;;  %s2264_s8 = inlined_call_operand.vmem [shape: f32[1,128], index: 8, kind: input, shape index: {}]   ;;  %s2265_s9 = inlined_call_operand.vmem [shape: f32[1,128], index: 9, kind: input, shape index: {}]   ;;  %s2266_s10 = inlined_call_operand.hbm [shape: bf16[128,128], index: 10, kind: input, shape index: {}]   ;;  %s2267_s11 = inlined_call_operand.vmem [shape: f32[1,128], index: 11, kind: input, shape index: {}]   ;;  %s2268_s12 = inlined_call_operand.hbm [shape: f32[64,128], index: 12, kind: output, shape index: {}]  }
   0x1   :  { %18 = vsyncpa [#allocation7], 0 }
   0x2   :  { %19 = vsyncpa [#allocation5], 0  ;;  %s1844_s21 = smov [#allocation6]   ;;  %s1845_s23 = smov [#allocation3]  }
   0x3   :  { %s41_s22 = sshll.u32 %s1844_s21, 4  ;;  %s29_s24 = sshll.u32 %s1845_s23, 4  ;;  %s42_s22 = int_to_ptr.vmem [resolvable:$true] %s41_s22  ;;  %s1921_s24 = int_to_ptr.vmem [resolvable:$true] %s29_s24 }
   0x4   :  { %s1750_s27 = scalar_lea.hbm %s2259_s3, 1024 }
   0x5   :  { %p1751_p0 = scmp.ne.s32.totalorder %s2259_s3, %s1750_s27  ;;  %p1754_p1 = scmp.lt.u32.totalorder %s1750_s27, %s2259_s3 }
   0x7   :  { %p1756_p2 = pnand %p1754_p1, %p1751_p0 }
   0x9   :  { %1759 = shalt.err (!%p1756_p2)
}
   0xa   :  { %s1760_s14 = scalar_lea.vmem %s42_s22, 1024  ;;  %p1765_p4 = scmp.lt.s32.totalorder %s42_s22, %s42_s22 }
   0xb   :  { %p1761_p3 = scmp.ne.s32.totalorder %s42_s22, %s1760_s14  ;;  %p1766_p5 = scmp.lt.s32.totalorder %s1760_s14, %s1760_s14 }
   0xd   :  { %p1767_p6 = por %p1766_p5, %p1765_p4 }
   0xf   :  { %p1768_p7 = pnand %p1767_p6, %p1761_p3 }
  0x11   :  { %1771 = shalt.err (!%p1768_p7)
}
  0x12   :  { %s1846_s15 = smov 64   ;;  %s1847_s16 = smov 4  }
  0x13   :  { %47 = dma.hbm_to_vmem [thread:$0]  %s2259_s3, 1024, %s42_s22, [#allocation7], %s1846_s15, %s1846_s15, %s1847_s16  }
  0x14   :  { %s1772_s21 = scalar_lea.hbm %s2258_s2, 1024 }
  0x15   :  { %p1773_p8 = scmp.ne.s32.totalorder %s2258_s2, %s1772_s21  ;;  %p1776_p9 = scmp.lt.u32.totalorder %s1772_s21, %s2258_s2 }
  0x17   :  { %p1778_p10 = pnand %p1776_p9, %p1773_p8 }
  0x19   :  { %1781 = shalt.err (!%p1778_p10)
}
  0x1a   :  { %s1782_s28 = scalar_lea.vmem %s1921_s24, 1024  ;;  %p1787_p12 = scmp.lt.s32.totalorder %s1921_s24, %s1921_s24 }
  0x1b   :  { %p1783_p11 = scmp.ne.s32.totalorder %s1921_s24, %s1782_s28  ;;  %p1788_p13 = scmp.lt.s32.totalorder %s1782_s28, %s1782_s28 }
  0x1d   :  { %p1789_p0 = por %p1788_p13, %p1787_p12 }
  0x1f   :  { %p1790_p1 = pnand %p1789_p0, %p1783_p11 }
  0x21   :  { %1793 = shalt.err (!%p1790_p1)
}
  0x22   :  { %35 = dma.hbm_to_vmem [thread:$0]  %s2258_s2, 1024, %s1921_s24, [#allocation4], %s1846_s15, %s1846_s15, %s1847_s16  }
  0x23   :  { %s1848_s29 = smov [#allocation8]   ;;  %s1794_s17 = scalar_lea.hbm %s2266_s10, 1024 }
  0x24   :  { %s65_s30 = sshll.u32 %s1848_s29, 4  ;;  %p1795_p2 = scmp.ne.s32.totalorder %s2266_s10, %s1794_s17  ;;  %s66_s30 = int_to_ptr.vmem [resolvable:$true] %s65_s30 }
  0x25   :  { %p1798_p3 = scmp.lt.u32.totalorder %s1794_s17, %s2266_s10 }
  0x27   :  { %p1800_p4 = pnand %p1798_p3, %p1795_p2 }
  0x29   :  { %1803 = shalt.err (!%p1800_p4)
}
  0x2a   :  { %s1804_s23 = scalar_lea.vmem %s66_s30, 1024  ;;  %p1809_p6 = scmp.lt.s32.totalorder %s66_s30, %s66_s30 }
  0x2b   :  { %p1805_p5 = scmp.ne.s32.totalorder %s66_s30, %s1804_s23  ;;  %p1810_p7 = scmp.lt.s32.totalorder %s1804_s23, %s1804_s23 }
  0x2d   :  { %p1811_p8 = por %p1810_p7, %p1809_p6 }
  0x2f   :  { %p1812_p9 = pnand %p1811_p8, %p1805_p5 }
  0x31   :  { %1815 = shalt.err (!%p1812_p9)
}
  0x32   :  { %71 = dma.hbm_to_vmem [thread:$0]  %s2266_s10, 1024, %s66_s30, [#allocation7], %s1846_s15, %s1846_s15, %s1847_s16  }
  0x33   :  { %1838 = dma.done.wait [#allocation4], 1024  }
  0x34   :  { %1839 = vsyncadd [#allocation4], 4294966272 }
  0x35   :  { %1840 = dma.done.wait [#allocation7], 2048  }
  0x36   :  { %1841 = vsyncadd [#allocation7], 4294965248  ;;  %v1849_v0 = vmov 0.0   ;;  %v1712_v1 = vld [vmem:[%s2257_s1] sm:$0xff]   ;;  %v1713_v2 = vld [vmem:[%s2257_s1 + $0x8] sm:$0xff]   ;;  %vm100_vm0 = vcmask 130048  }
  0x37   :  { %84 = vst [vmem:[#allocation2] sm:$0xff] %v1849_v0  ;;  %85 = vst [vmem:[#allocation2 + $0x8] sm:$0xff] %v1849_v0  ;;  %1418 = vmatprep.subr.bf16.mxu1 %v1712_v1  ;;  %v1714_v3 = vld [vmem:[%s2257_s1 + $0x10] sm:$0xff]   ;;  %v1715_v4 = vld [vmem:[%s2257_s1 + $0x18] sm:$0xff]   ;;  %v1850_v29 = vmov 0.0|0.0   ;;  %vm1851_vm1 = vmmov 0  }
  0x38   :  { %86 = vst [vmem:[#allocation2 + $0x10] sm:$0xff] %v1849_v0  ;;  %87 = vst [vmem:[#allocation2 + $0x18] sm:$0xff] %v1849_v0  ;;  %1419 = vmatpush3.bf16.msra.mxu1 %v1712_v1  ;;  %v92_v5 = vld [vmem:[%s2256_s0] sm:$0xff]  ;;  %v93_v6 = vld [vmem:[%s2256_s0 + $0x8] sm:$0xff]  ;;  %1628 = vmatprep.subr.bf16.mxu0 %v1850_v29  ;;  %vm250_vm2 = vcmask 523264   ;;  %v1852_v54 = vmov 0.015625  }
  0x39   :  { %88 = vst [vmem:[#allocation2 + $0x20] sm:$0xff] %v1849_v0  ;;  %89 = vst [vmem:[#allocation2 + $0x28] sm:$0xff] %v1849_v0  ;;  %1420 = vmatprep.subr.bf16.mxu1 %v1713_v2  ;;  %v94_v7 = vld [vmem:[%s2256_s0 + $0x10] sm:$0xff]  ;;  %v95_v8 = vld [vmem:[%s2256_s0 + $0x18] sm:$0xff]  ;;  %1458 = vmatprep.mubr.msk.f32.mxu0 %vm1851_vm1, %v1849_v0  ;;  %s1853_s21 = smov [#allocation9]  }
  0x3a   :  { %90 = vst [vmem:[#allocation2 + $0x30] sm:$0xff] %v1849_v0  ;;  %91 = vst [vmem:[#allocation2 + $0x38] sm:$0xff] %v1849_v0  ;;  %v96_v9 = vld [vmem:[%s2256_s0 + $0x20] sm:$0xff]  ;;  %v97_v10 = vld [vmem:[%s2256_s0 + $0x28] sm:$0xff]  ;;  %s1264_s23 = sshll.u32 %s1853_s21, 4  ;;  %s1265_s23 = int_to_ptr.vmem [resolvable:$true] %s1264_s23 }
  0x3b   :  { %101 = vst.msk [vmem:[#allocation2] sm:$0xff] %vm100_vm0, %v92_v5  ;;  %102 = vst.msk [vmem:[#allocation2 + $0x8] sm:$0xff] %vm100_vm0, %v93_v6  ;;  %v1716_v11 = vld [vmem:[%s2257_s1 + $0x20] sm:$0xff]   ;;  %v98_v12 = vld [vmem:[%s2256_s0 + $0x30] sm:$0xff]  ;;  %p1821_p11 = scmp.lt.s32.totalorder %s1265_s23, %s1265_s23 }
  0x3c   :  { %1421 = vmatpush3.bf16.msra.mxu1 %v1713_v2  ;;  %103 = vst.msk [vmem:[#allocation2 + $0x10] sm:$0xff] %vm100_vm0, %v94_v7  ;;  %104 = vst.msk [vmem:[#allocation2 + $0x18] sm:$0xff] %vm100_vm0, %v95_v8  ;;  %v99_v13 = vld [vmem:[%s2256_s0 + $0x38] sm:$0xff]  ;;  %v1717_v14 = vld [vmem:[%s2257_s1 + $0x28] sm:$0xff]   ;;  %v412_v7 = vlaneseq }
  0x3d   :  { %1422 = vmatprep.subr.bf16.mxu1 %v1714_v3  ;;  %105 = vst.msk [vmem:[#allocation2 + $0x20] sm:$0xff] %vm100_vm0, %v96_v9  ;;  %106 = vst.msk [vmem:[#allocation2 + $0x28] sm:$0xff] %vm100_vm0, %v97_v10  ;;  %v1718_v18 = vld [vmem:[%s2257_s1 + $0x30] sm:$0xff]   ;;  %v1719_v19 = vld [vmem:[%s2257_s1 + $0x38] sm:$0xff]  }
  0x3e   :  { %107 = vst.msk [vmem:[#allocation2 + $0x30] sm:$0xff] %vm100_vm0, %v98_v12  ;;  %108 = vst.msk [vmem:[#allocation2 + $0x38] sm:$0xff] %vm100_vm0, %v99_v13  ;;  %v1720_v55 = vld [vmem:[#allocation3] sm:$0xff]   ;;  %v1721_v56 = vld [vmem:[#allocation3 + $0x8] sm:$0xff]   ;;  %v413_v8 = vshrl.u32 %v412_v7, 7 }
  0x3f   :  { %v1722_v57 = vld [vmem:[#allocation3 + $0x10] sm:$0xff]   ;;  %v1723_v58 = vld [vmem:[#allocation3 + $0x18] sm:$0xff]   ;;  %v1724_v59 = vld [vmem:[#allocation3 + $0x20] sm:$0xff]  }
  0x40   :  { %1423 = vmatpush3.bf16.msra.mxu1 %v1714_v3  ;;  %v1725_v60 = vld [vmem:[#allocation3 + $0x28] sm:$0xff]   ;;  %v1726_v61 = vld [vmem:[#allocation3 + $0x30] sm:$0xff]   ;;  %v1727_v62 = vld [vmem:[#allocation3 + $0x38] sm:$0xff]   ;;  %v2111_v10 = vsub.s32 0, %v413_v8 }
  0x41   :  { %1424 = vmatprep.subr.bf16.mxu1 %v1715_v4  ;;  %v404_v9 = vld [vmem:[%s2260_s4] sm:$0x1] }
  0x42   :  { %v109_v15 = vld [vmem:[#allocation2] sm:$0xff]  ;;  %v110_v16 = vld [vmem:[#allocation2 + $0x8] sm:$0xff] }
  0x43   :  { %v2031_v17 = vpack.c.bf16 %v110_v16, %v109_v15  ;;  %v111_v20 = vld [vmem:[#allocation2 + $0x10] sm:$0xff]  ;;  %v112_v21 = vld [vmem:[#allocation2 + $0x18] sm:$0xff]  ;;  %v408_v13 = vld [vmem:[%s2263_s7] sm:$0x1] }
  0x44   :  { %1425 = vmatpush3.bf16.msra.mxu1 %v1715_v4  ;;  %v113_v22 = vld [vmem:[#allocation2 + $0x20] sm:$0xff]  ;;  %v114_v23 = vld [vmem:[#allocation2 + $0x28] sm:$0xff]  ;;  %v2040_v24 = vpack.c.bf16 %v112_v21, %v111_v20 }
  0x45   :  { %1426 = vmatprep.subr.bf16.mxu1 %v1716_v11  ;;  %1434 = vmatprep.mubr.bf16.mxu1 %v2031_v17  ;;  %v2042_v25 = vpack.c.bf16 %v114_v23, %v113_v22  ;;  %v115_v26 = vld [vmem:[#allocation2 + $0x30] sm:$0xff]  ;;  %v116_v27 = vld [vmem:[#allocation2 + $0x38] sm:$0xff] }
  0x46   :  { %v2046_v28 = vpack.c.bf16 %v116_v27, %v115_v26 }
  0x48   :  { %1427 = vmatpush3.bf16.msra.mxu1 %v1716_v11 }
  0x49   :  { %1428 = vmatprep.subr.bf16.mxu1 %v1717_v14 }
  0x4c   :  { %1429 = vmatpush3.bf16.msra.mxu1 %v1717_v14 }
  0x4d   :  { %1430 = vmatprep.subr.bf16.mxu1 %v1718_v18 }
  0x50   :  { %1431 = vmatpush3.bf16.msra.mxu1 %v1718_v18 }
  0x51   :  { %1432 = vmatprep.subr.bf16.mxu1 %v1719_v19 }
  0x54   :  { %1433 = vmatpush3.bf16.msra.mxu1 %v1719_v19 }
  0x55   :  { %1640 = vmatprep.subr.bf16.mxu1 %v1850_v29 }
  0x57   :  { %1435 = vmatmul.mubr.bf16.vlgmr.msra.gmra.mrb[0].mxu1 %v2040_v24 }
  0x58   :  { %1438 = vmatprep.mubr.bf16.mxu1 %v2042_v25 }
  0x5f   :  { %1439 = vmatmul.mubr.bf16.gmra.mrb[4].mxu1 %v2046_v28 }
  0x60   :  { %1477 = vmatprep.mubr.msk.f32.mxu1 %vm1851_vm1, %v1849_v0 }
 0x12a   :  { %v2055_v30 = vpop.f32.mrb[0].mxu1 }
 0x12b   :  { %v2057_v31 = vpop.f32.mrb[1].mxu1  ;;  %v326_v33 = vmul.f32 %v2055_v30, %v2055_v30 }
 0x12c   :  { %v2059_v32 = vpop.f32.mrb[2].mxu1  ;;  %v324_v37 = vmul.f32 %v2057_v31, %v2057_v31 }
 0x12d   :  { %v1632_v34 = vpack.c.bf16 %v2059_v32, %v2055_v30  ;;  %v327_v35 = vmul.f32 %v2059_v32, %v2059_v32  ;;  %v2067_v36 = vpop.f32.mrb[3].mxu1 }
 0x12e   :  { %v325_v38 = vmul.f32 %v2067_v36, %v2067_v36  ;;  %v1629_v39 = vpack.c.bf16 %v2067_v36, %v2057_v31 }
 0x12f   :  { %v1644_v40 = vpack.c.bf16 %v327_v35, %v326_v33 }
 0x130   :  { %v1641_v41 = vpack.c.bf16 %v325_v38, %v324_v37  ;;  %1630 = vmatpush3.bf16.msra.mxu0 %v1629_v39 }
 0x131   :  { %1631 = vmatprep.subr.bf16.mxu0 %v1850_v29 }
 0x132   :  { %v2076_v42 = vpop.f32.mrb[4].mxu1  ;;  %1642 = vmatpush3.bf16.msra.mxu1 %v1641_v41 }
 0x133   :  { %v2078_v43 = vpop.f32.mrb[5].mxu1  ;;  %1643 = vmatprep.subr.bf16.mxu1 %v1850_v29  ;;  %v330_v45 = vmul.f32 %v2076_v42, %v2076_v42 }
 0x134   :  { %v2081_v44 = vpop.f32.mrb[6].mxu1  ;;  %1633 = vmatpush3.bf16.msra.mxu0 %v1632_v34  ;;  %v328_v49 = vmul.f32 %v2078_v43, %v2078_v43 }
 0x135   :  { %v1638_v46 = vpack.c.bf16 %v2081_v44, %v2076_v42  ;;  %v331_v47 = vmul.f32 %v2081_v44, %v2081_v44  ;;  %v2089_v48 = vpop.f32.mrb[7].mxu1  ;;  %1634 = vmatprep.subr.bf16.mxu0 %v1850_v29 }
 0x136   :  { %v1635_v50 = vpack.c.bf16 %v2089_v48, %v2078_v43  ;;  %v329_v51 = vmul.f32 %v2089_v48, %v2089_v48  ;;  %1645 = vmatpush3.bf16.msra.mxu1 %v1644_v40 }
 0x137   :  { %v1650_v52 = vpack.c.bf16 %v331_v47, %v330_v45  ;;  %1646 = vmatprep.subr.bf16.mxu1 %v1850_v29 }
 0x138   :  { %v1647_v53 = vpack.c.bf16 %v329_v51, %v328_v49  ;;  %1636 = vmatpush3.bf16.msra.mxu0 %v1635_v50 }
 0x139   :  { %1637 = vmatprep.subr.bf16.mxu0 %v1850_v29 }
 0x13a   :  { %1648 = vmatpush3.bf16.msra.mxu1 %v1647_v53 }
 0x13b   :  { %1649 = vmatprep.subr.bf16.mxu1 %v1850_v29 }
 0x13c   :  { %1639 = vmatpush3.bf16.msra.mxu0 %v1638_v46 }
 0x13d   :  { %1480 = vmatprep.subr.bf16.mxu0 %v1720_v55 }
 0x13e   :  { %1651 = vmatpush3.bf16.msra.mxu1 %v1650_v52 }
 0x13f   :  { %1459 = vmatmul.mubr.msk.f32.vlgmr.msra.gmra.mrb[0].mxu0 %vm250_vm2, %v1852_v54  ;;  %1652 = vmatprep.subr.bf16.mxu1 %v1850_v29 }
 0x140   :  { %1481 = vmatpush3.bf16.msra.mxu0 %v1720_v55 }
 0x141   :  { %1478 = vmatmul.mubr.msk.f32.vlgmr.msra.gmra.mrb[8].mxu1 %vm250_vm2, %v1852_v54  ;;  %1482 = vmatprep.subr.bf16.mxu0 %v1721_v56 }
 0x142   :  { %1520 = vmatprep.mubr.msk.f32.mxu1 %vm1851_vm1, %v1849_v0 }
 0x144   :  { %1483 = vmatpush3.bf16.msra.mxu0 %v1721_v56 }
 0x145   :  { %1484 = vmatprep.subr.bf16.mxu0 %v1722_v57 }
 0x148   :  { %1485 = vmatpush3.bf16.msra.mxu0 %v1722_v57 }
 0x149   :  { %1486 = vmatprep.subr.bf16.mxu0 %v1723_v58 }
 0x14c   :  { %1487 = vmatpush3.bf16.msra.mxu0 %v1723_v58 }
 0x14d   :  { %1488 = vmatprep.subr.bf16.mxu0 %v1724_v59 }
 0x150   :  { %1489 = vmatpush3.bf16.msra.mxu0 %v1724_v59 }
 0x151   :  { %1490 = vmatprep.subr.bf16.mxu0 %v1725_v60 }
 0x154   :  { %1491 = vmatpush3.bf16.msra.mxu0 %v1725_v60 }
 0x155   :  { %1492 = vmatprep.subr.bf16.mxu0 %v1726_v61 }
 0x158   :  { %1493 = vmatpush3.bf16.msra.mxu0 %v1726_v61 }
 0x159   :  { %1494 = vmatprep.subr.bf16.mxu0 %v1727_v62 }
 0x15c   :  { %1495 = vmatpush3.bf16.msra.mxu0 %v1727_v62 }
 0x212   :  { %v320_v63 = vpop.f32.mrb[0].mxu0 }
 0x213   :  { %v402_v1 = vmul.f32 %v320_v63, %v320_v63  ;;  %v1460_v2 = vpop.f32.mrb[1].mxu0 }
 0x214   :  { %v398_v3 = vpop.f32.mrb[8].mxu1 }
 0x215   :  { %v403_v4 = vsub.f32 %v398_v3, %v402_v1  ;;  %v1479_v5 = vpop.f32.mrb[9].mxu1 }
 0x217   :  { %v405_v6 = vadd.f32 1e-05, %v403_v4 }
 0x219   :  { %1744 = vrsqrt.f32 %v405_v6 }
 0x223   :  { %v1745_v11 = vpop.eup %1744 }
 0x224   :  { %v407_v12 = vmul.f32 %v1745_v11, %v404_v9 }
 0x226   :  { %v409_v14 = vmul.f32 %v407_v12, %v320_v63  ;;  %v415_v15 = vrot.slane %v407_v12, %v2111_v10 }
 0x228   :  { %v410_v16 = vsub.f32 %v408_v13, %v409_v14  ;;  %v417_v18 = vmul.f32 %v415_v15, %v2057_v31  ;;  %v418_v19 = vmul.f32 %v415_v15, %v2067_v36  ;;  %v419_v20 = vmul.f32 %v2055_v30, %v415_v15  ;;  %v1728_v14 = vld [vmem:[#allocation6] sm:$0xff]  }
 0x229   :  { %v420_v21 = vmul.f32 %v2059_v32, %v415_v15  ;;  %v421_v22 = vmul.f32 %v415_v15, %v2078_v43  ;;  %v422_v23 = vmul.f32 %v415_v15, %v2089_v48  ;;  %v423_v26 = vmul.f32 %v2076_v42, %v415_v15  ;;  %1542 = vmatprep.subr.bf16.mxu0 %v1728_v14 }
 0x22a   :  { %v429_v27 = vrot.slane %v410_v16, %v2111_v10  ;;  %v424_v33 = vmul.f32 %v2081_v44, %v415_v15  ;;  %v1729_v15 = vld [vmem:[#allocation6 + $0x8] sm:$0xff]   ;;  %v1730_v16 = vld [vmem:[#allocation6 + $0x10] sm:$0xff]  }
 0x22c   :  { %v431_v34 = vadd.f32 %v429_v27, %v417_v18  ;;  %v432_v35 = vadd.f32 %v429_v27, %v418_v19  ;;  %v433_v37 = vadd.f32 %v429_v27, %v419_v20  ;;  %v434_v31 = vadd.f32 %v429_v27, %v420_v21  ;;  %v1731_v18 = vld [vmem:[#allocation6 + $0x18] sm:$0xff]   ;;  %v1732_v19 = vld [vmem:[#allocation6 + $0x20] sm:$0xff]   ;;  %v1733_v20 = vld [vmem:[#allocation6 + $0x28] sm:$0xff]  }
 0x22d   :  { %v435_v38 = vadd.f32 %v429_v27, %v421_v22  ;;  %v436_v36 = vadd.f32 %v429_v27, %v422_v23  ;;  %v437_v39 = vadd.f32 %v429_v27, %v423_v26  ;;  %v438_v30 = vadd.f32 %v429_v27, %v424_v33  ;;  %v1734_v21 = vld [vmem:[#allocation6 + $0x30] sm:$0xff]   ;;  %v1735_v22 = vld [vmem:[#allocation6 + $0x38] sm:$0xff]  }
 0x22e   :  { %v439_v40 = vmax.f32 %v431_v34, 0.0  ;;  %v440_v32 = vmax.f32 %v432_v35, 0.0  ;;  %v441_v41 = vmax.f32 %v433_v37, 0.0  ;;  %v442_v43 = vmax.f32 %v434_v31, 0.0  ;;  %v730_v31 = vld [vmem:[%s2261_s5] sm:$0x1] }
 0x22f   :  { %v443_v45 = vmax.f32 %v435_v38, 0.0  ;;  %v444_v46 = vmax.f32 %v436_v36, 0.0  ;;  %v445_v47 = vmax.f32 %v437_v39, 0.0  ;;  %v446_v42 = vmax.f32 %v438_v30, 0.0  ;;  %v734_v39 = vld [vmem:[%s2264_s8] sm:$0x1] }
 0x230   :  { %v447_v48 = vpack.c.bf16 %v440_v32, %v439_v40  ;;  %v448_v49 = vpack.c.bf16 %v442_v43, %v441_v41 }
 0x231   :  { %v449_v50 = vpack.c.bf16 %v444_v46, %v443_v45  ;;  %v450_v44 = vpack.c.bf16 %v446_v42, %v445_v47 }
 0x232   :  { %1496 = vmatprep.mubr.bf16.mxu0 %v447_v48 }
 0x233   :  { %1497 = vmatmul.mubr.bf16.vlgmr.msra.gmra.mrb[4].mxu0 %v448_v49 }
 0x234   :  { %1500 = vmatprep.mubr.bf16.mxu0 %v449_v50  ;;  %1543 = vmatpush3.bf16.msra.mxu0 %v1728_v14  ;;  %v1741_v14 = vld [vmem:[#allocation8 + $0x28] sm:$0xff]  }
 0x235   :  { %1544 = vmatprep.subr.bf16.mxu0 %v1729_v15 }
 0x238   :  { %1545 = vmatpush3.bf16.msra.mxu0 %v1729_v15  ;;  %v1742_v15 = vld [vmem:[#allocation8 + $0x30] sm:$0xff]  }
 0x239   :  { %1546 = vmatprep.subr.bf16.mxu0 %v1730_v16 }
 0x23b   :  { %1501 = vmatmul.mubr.bf16.gmra.mrb[8].mxu0 %v450_v44 }
 0x23c   :  { %1547 = vmatpush3.bf16.msra.mxu0 %v1730_v16 }
 0x23d   :  { %1548 = vmatprep.subr.bf16.mxu0 %v1731_v18 }
 0x240   :  { %1549 = vmatpush3.bf16.msra.mxu0 %v1731_v18 }
 0x241   :  { %1550 = vmatprep.subr.bf16.mxu0 %v1732_v19 }
 0x244   :  { %1551 = vmatpush3.bf16.msra.mxu0 %v1732_v19 }
 0x245   :  { %1552 = vmatprep.subr.bf16.mxu0 %v1733_v20 }
 0x248   :  { %1553 = vmatpush3.bf16.msra.mxu0 %v1733_v20 }
 0x249   :  { %1554 = vmatprep.subr.bf16.mxu0 %v1734_v21 }
 0x24c   :  { %1555 = vmatpush3.bf16.msra.mxu0 %v1734_v21 }
 0x24d   :  { %1556 = vmatprep.subr.bf16.mxu0 %v1735_v22 }
 0x250   :  { %1557 = vmatpush3.bf16.msra.mxu0 %v1735_v22 }
 0x306   :  { %v2126_v51 = vpop.f32.mrb[4].mxu0 }
 0x307   :  { %v2128_v52 = vpop.f32.mrb[5].mxu0  ;;  %v652_v55 = vmul.f32 %v2126_v51, %v2126_v51 }
 0x308   :  { %v2130_v53 = vpop.f32.mrb[6].mxu0  ;;  %v650_v59 = vmul.f32 %v2128_v52, %v2128_v52 }
 0x309   :  { %v1656_v56 = vpack.c.bf16 %v2130_v53, %v2126_v51  ;;  %v653_v57 = vmul.f32 %v2130_v53, %v2130_v53  ;;  %v2138_v58 = vpop.f32.mrb[7].mxu0 }
 0x30a   :  { %v1653_v60 = vpack.c.bf16 %v2138_v58, %v2128_v52  ;;  %v651_v61 = vmul.f32 %v2138_v58, %v2138_v58 }
 0x30b   :  { %v1668_v62 = vpack.c.bf16 %v653_v57, %v652_v55 }
 0x30c   :  { %v1665_v63 = vpack.c.bf16 %v651_v61, %v650_v59  ;;  %1654 = vmatpush3.bf16.msra.mxu1 %v1653_v60 }
 0x30d   :  { %1655 = vmatprep.subr.bf16.mxu1 %v1850_v29 }
 0x30e   :  { %v2147_v1 = vpop.f32.mrb[8].mxu0 }
 0x30f   :  { %v2149_v2 = vpop.f32.mrb[9].mxu0  ;;  %v656_v4 = vmul.f32 %v2147_v1, %v2147_v1 }
 0x310   :  { %v2151_v3 = vpop.f32.mrb[10].mxu0  ;;  %1657 = vmatpush3.bf16.msra.mxu1 %v1656_v56  ;;  %v654_v8 = vmul.f32 %v2149_v2, %v2149_v2 }
 0x311   :  { %v1662_v5 = vpack.c.bf16 %v2151_v3, %v2147_v1  ;;  %v657_v6 = vmul.f32 %v2151_v3, %v2151_v3  ;;  %v2159_v7 = vpop.f32.mrb[11].mxu0  ;;  %1658 = vmatprep.subr.bf16.mxu1 %v1850_v29 }
 0x312   :  { %v1659_v9 = vpack.c.bf16 %v2159_v7, %v2149_v2  ;;  %v655_v11 = vmul.f32 %v2159_v7, %v2159_v7 }
 0x313   :  { %v1674_v12 = vpack.c.bf16 %v657_v6, %v656_v4 }
 0x314   :  { %v1671_v13 = vpack.c.bf16 %v655_v11, %v654_v8  ;;  %1660 = vmatpush3.bf16.msra.mxu1 %v1659_v9  ;;  %v1736_v8 = vld [vmem:[#allocation8] sm:$0xff]   ;;  %v1737_v9 = vld [vmem:[#allocation8 + $0x8] sm:$0xff]   ;;  %v1738_v11 = vld [vmem:[#allocation8 + $0x10] sm:$0xff]  }
 0x315   :  { %1661 = vmatprep.subr.bf16.mxu1 %v1850_v29  ;;  %1604 = vmatprep.subr.bf16.mxu0 %v1736_v8 }
 0x318   :  { %1663 = vmatpush3.bf16.msra.mxu1 %v1662_v5 }
 0x319   :  { %1664 = vmatprep.subr.bf16.mxu1 %v1850_v29 }
 0x31b   :  { %1521 = vmatmul.mubr.msk.f32.vlgmr.msra.gmra.mrb[10].mxu1 %vm250_vm2, %v1852_v54 }
 0x31c   :  { %1666 = vmatpush3.bf16.msra.mxu1 %v1665_v63  ;;  %1539 = vmatprep.mubr.msk.f32.mxu1 %vm1851_vm1, %v1849_v0 }
 0x31d   :  { %1667 = vmatprep.subr.bf16.mxu1 %v1850_v29 }
 0x320   :  { %1669 = vmatpush3.bf16.msra.mxu1 %v1668_v62 }
 0x321   :  { %1670 = vmatprep.subr.bf16.mxu1 %v1850_v29 }
 0x324   :  { %1672 = vmatpush3.bf16.msra.mxu1 %v1671_v13  ;;  %v1740_v13 = vld [vmem:[#allocation8 + $0x20] sm:$0xff]  }
 0x325   :  { %1673 = vmatprep.subr.bf16.mxu1 %v1850_v29 }
 0x328   :  { %1675 = vmatpush3.bf16.msra.mxu1 %v1674_v12  ;;  %v1739_v12 = vld [vmem:[#allocation8 + $0x18] sm:$0xff]  }
 0x329   :  { %1676 = vmatprep.subr.bf16.mxu1 %v1850_v29 }
 0x32b   :  { %1540 = vmatmul.mubr.msk.f32.vlgmr.msra.gmra.mrb[12].mxu1 %vm250_vm2, %v1852_v54 }
 0x32c   :  { %1582 = vmatprep.mubr.msk.f32.mxu1 %vm1851_vm1, %v1849_v0 }
 0x3ee   :  { %v646_v23 = vpop.f32.mrb[10].mxu1 }
 0x3ef   :  { %v1522_v26 = vpop.f32.mrb[11].mxu1  ;;  %v728_v27 = vmul.f32 %v646_v23, %v646_v23 }
 0x3fe   :  { %v724_v33 = vpop.f32.mrb[12].mxu1 }
 0x3ff   :  { %v729_v34 = vsub.f32 %v724_v33, %v728_v27  ;;  %v1541_v35 = vpop.f32.mrb[13].mxu1 }
 0x401   :  { %v731_v37 = vadd.f32 1e-05, %v729_v34 }
 0x403   :  { %1746 = vrsqrt.f32 %v731_v37 }
 0x40d   :  { %v1747_v38 = vpop.eup %1746 }
 0x40e   :  { %v733_v36 = vmul.f32 %v1747_v38, %v730_v31 }
 0x410   :  { %v735_v30 = vmul.f32 %v733_v36, %v646_v23  ;;  %v741_v40 = vrot.slane %v733_v36, %v2111_v10 }
 0x412   :  { %v736_v32 = vsub.f32 %v734_v39, %v735_v30  ;;  %v743_v41 = vmul.f32 %v741_v40, %v2128_v52  ;;  %v744_v43 = vmul.f32 %v741_v40, %v2138_v58  ;;  %v745_v45 = vmul.f32 %v2126_v51, %v741_v40 }
 0x413   :  { %v746_v46 = vmul.f32 %v2130_v53, %v741_v40  ;;  %v747_v47 = vmul.f32 %v741_v40, %v2149_v2  ;;  %v748_v42 = vmul.f32 %v741_v40, %v2159_v7  ;;  %v749_v48 = vmul.f32 %v2147_v1, %v741_v40 }
 0x414   :  { %v755_v49 = vrot.slane %v736_v32, %v2111_v10  ;;  %v750_v50 = vmul.f32 %v2151_v3, %v741_v40 }
 0x416   :  { %v757_v44 = vadd.f32 %v755_v49, %v743_v41  ;;  %v758_v55 = vadd.f32 %v755_v49, %v744_v43  ;;  %v759_v56 = vadd.f32 %v755_v49, %v745_v45  ;;  %v760_v52 = vadd.f32 %v755_v49, %v746_v46 }
 0x417   :  { %v761_v57 = vadd.f32 %v755_v49, %v747_v47  ;;  %v762_v58 = vadd.f32 %v755_v49, %v748_v42  ;;  %v763_v59 = vadd.f32 %v755_v49, %v749_v48  ;;  %v764_v51 = vadd.f32 %v755_v49, %v750_v50 }
 0x418   :  { %v765_v60 = vmax.f32 %v757_v44, 0.0  ;;  %v766_v53 = vmax.f32 %v758_v55, 0.0  ;;  %v767_v61 = vmax.f32 %v759_v56, 0.0  ;;  %v768_v62 = vmax.f32 %v760_v52, 0.0 }
 0x419   :  { %v769_v63 = vmax.f32 %v761_v57, 0.0  ;;  %v770_v2 = vmax.f32 %v762_v58, 0.0  ;;  %v771_v4 = vmax.f32 %v763_v59, 0.0  ;;  %v772_v1 = vmax.f32 %v764_v51, 0.0  ;;  %v1060_v51 = vld [vmem:[%s2265_s9] sm:$0x1] }
 0x41a   :  { %v773_v5 = vpack.c.bf16 %v766_v53, %v765_v60  ;;  %v774_v6 = vpack.c.bf16 %v768_v62, %v767_v61 }
 0x41b   :  { %v775_v7 = vpack.c.bf16 %v770_v2, %v769_v63  ;;  %v776_v3 = vpack.c.bf16 %v772_v1, %v771_v4 }
 0x41c   :  { %1558 = vmatprep.mubr.bf16.mxu0 %v773_v5 }
 0x41d   :  { %1559 = vmatmul.mubr.bf16.vlgmr.msra.gmra.mrb[12].mxu0 %v774_v6 }
 0x41e   :  { %1562 = vmatprep.mubr.bf16.mxu0 %v775_v7  ;;  %1605 = vmatpush3.bf16.msra.mxu0 %v1736_v8 }
 0x41f   :  { %1606 = vmatprep.subr.bf16.mxu0 %v1737_v9 }
 0x422   :  { %1607 = vmatpush3.bf16.msra.mxu0 %v1737_v9 }
 0x423   :  { %1608 = vmatprep.subr.bf16.mxu0 %v1738_v11 }
 0x425   :  { %1563 = vmatmul.mubr.bf16.gmra.mrb[16].mxu0 %v776_v3 }
 0x426   :  { %1620 = vmatprep.mubr.bf16.mxu0 %v2031_v17  ;;  %1609 = vmatpush3.bf16.msra.mxu0 %v1738_v11  ;;  %v1743_v17 = vld [vmem:[#allocation8 + $0x38] sm:$0xff]  }
 0x427   :  { %1610 = vmatprep.subr.bf16.mxu0 %v1739_v12 }
 0x42a   :  { %1611 = vmatpush3.bf16.msra.mxu0 %v1739_v12 }
 0x42b   :  { %1612 = vmatprep.subr.bf16.mxu0 %v1740_v13 }
 0x42e   :  { %1613 = vmatpush3.bf16.msra.mxu0 %v1740_v13 }
 0x42f   :  { %1614 = vmatprep.subr.bf16.mxu0 %v1741_v14 }
 0x432   :  { %1615 = vmatpush3.bf16.msra.mxu0 %v1741_v14 }
 0x433   :  { %1616 = vmatprep.subr.bf16.mxu0 %v1742_v15 }
 0x436   :  { %1617 = vmatpush3.bf16.msra.mxu0 %v1742_v15 }
 0x437   :  { %1618 = vmatprep.subr.bf16.mxu0 %v1743_v17 }
 0x43a   :  { %1619 = vmatpush3.bf16.msra.mxu0 %v1743_v17 }
 0x43d   :  { %1621 = vmatmul.mubr.bf16.vlgmr.msra.gmra.mrb[20].mxu0 %v2040_v24 }
 0x43e   :  { %1624 = vmatprep.mubr.bf16.mxu0 %v2042_v25 }
 0x445   :  { %1625 = vmatmul.mubr.bf16.gmra.mrb[24].mxu0 %v2046_v28 }
 0x4f0   :  { %v2202_v16 = vpop.f32.mrb[12].mxu0 }
 0x4f1   :  { %v2204_v18 = vpop.f32.mrb[13].mxu0  ;;  %v978_v20 = vmul.f32 %v2202_v16, %v2202_v16 }
 0x4f2   :  { %v2206_v19 = vpop.f32.mrb[14].mxu0  ;;  %v976_v25 = vmul.f32 %v2204_v18, %v2204_v18 }
 0x4f3   :  { %v1680_v21 = vpack.c.bf16 %v2206_v19, %v2202_v16  ;;  %v979_v22 = vmul.f32 %v2206_v19, %v2206_v19  ;;  %v878_v24 = vpop.f32.mrb[15].mxu0 }
 0x4f4   :  { %v1677_v28 = vpack.c.bf16 %v878_v24, %v2204_v18  ;;  %v977_v23 = vmul.f32 %v878_v24, %v878_v24 }
 0x4f5   :  { %v1692_v26 = vpack.c.bf16 %v979_v22, %v978_v20 }
 0x4f6   :  { %v1689_v27 = vpack.c.bf16 %v977_v23, %v976_v25  ;;  %1678 = vmatpush3.bf16.msra.mxu1 %v1677_v28 }
 0x4f7   :  { %1679 = vmatprep.subr.bf16.mxu1 %v1850_v29 }
 0x4f8   :  { %v1564_v33 = vpop.f32.mrb[16].mxu0 }
 0x4f9   :  { %v891_v34 = vpop.f32.mrb[17].mxu0  ;;  %v982_v37 = vmul.f32 %v1564_v33, %v1564_v33 }
 0x4fa   :  { %v1565_v35 = vpop.f32.mrb[18].mxu0  ;;  %1681 = vmatpush3.bf16.msra.mxu1 %v1680_v21  ;;  %v980_v39 = vmul.f32 %v891_v34, %v891_v34 }
 0x4fb   :  { %v1686_v31 = vpack.c.bf16 %v1565_v35, %v1564_v33  ;;  %v983_v38 = vmul.f32 %v1565_v35, %v1565_v35  ;;  %v894_v36 = vpop.f32.mrb[19].mxu0  ;;  %1682 = vmatprep.subr.bf16.mxu1 %v1850_v29 }
 0x4fc   :  { %v1683_v30 = vpack.c.bf16 %v894_v36, %v891_v34  ;;  %v981_v40 = vmul.f32 %v894_v36, %v894_v36 }
 0x4fd   :  { %v1698_v32 = vpack.c.bf16 %v983_v38, %v982_v37 }
 0x4fe   :  { %v1695_v41 = vpack.c.bf16 %v981_v40, %v980_v39  ;;  %1684 = vmatpush3.bf16.msra.mxu1 %v1683_v30 }
 0x4ff   :  { %1685 = vmatprep.subr.bf16.mxu1 %v1850_v29 }
 0x502   :  { %1687 = vmatpush3.bf16.msra.mxu1 %v1686_v31 }
 0x503   :  { %1688 = vmatprep.subr.bf16.mxu1 %v1850_v29 }
 0x505   :  { %1583 = vmatmul.mubr.msk.f32.vlgmr.msra.gmra.mrb[14].mxu1 %vm250_vm2, %v1852_v54 }
 0x506   :  { %1690 = vmatpush3.bf16.msra.mxu1 %v1689_v27  ;;  %1601 = vmatprep.mubr.msk.f32.mxu1 %vm1851_vm1, %v1849_v0 }
 0x507   :  { %1691 = vmatprep.subr.bf16.mxu1 %v1850_v29 }
 0x50a   :  { %1693 = vmatpush3.bf16.msra.mxu1 %v1692_v26 }
 0x50b   :  { %1694 = vmatprep.subr.bf16.mxu1 %v1850_v29 }
 0x50e   :  { %1696 = vmatpush3.bf16.msra.mxu1 %v1695_v41 }
 0x50f   :  { %1697 = vmatprep.subr.bf16.mxu1 %v1850_v29  ;;  %v1056_v29 = vld [vmem:[%s2262_s6] sm:$0x1] }
 0x510   :  { %v1622_v43 = vpop.f32.mrb[20].mxu0 }
 0x511   :  { %v1197_v45 = vpop.f32.mrb[21].mxu0 }
 0x512   :  { %1699 = vmatpush3.bf16.msra.mxu1 %v1698_v32  ;;  %v1623_v46 = vpop.f32.mrb[22].mxu0 }
 0x513   :  { %v1200_v47 = vpop.f32.mrb[23].mxu0 }
 0x515   :  { %1602 = vmatmul.mubr.msk.f32.vlgmr.msra.gmra.mrb[16].mxu1 %vm250_vm2, %v1852_v54 }
 0x518   :  { %v1626_v42 = vpop.f32.mrb[24].mxu0 }
 0x519   :  { %v1213_v48 = vpop.f32.mrb[25].mxu0 }
 0x51a   :  { %v1627_v49 = vpop.f32.mrb[26].mxu0 }
 0x51b   :  { %v1216_v0 = vpop.f32.mrb[27].mxu0 }
 0x5d8   :  { %v972_v50 = vpop.f32.mrb[14].mxu1 }
 0x5d9   :  { %v1584_v44 = vpop.f32.mrb[15].mxu1  ;;  %v1054_v55 = vmul.f32 %v972_v50, %v972_v50 }
 0x5e8   :  { %v1050_v56 = vpop.f32.mrb[16].mxu1 }
 0x5e9   :  { %v1055_v52 = vsub.f32 %v1050_v56, %v1054_v55  ;;  %v1603_v57 = vpop.f32.mrb[17].mxu1 }
 0x5eb   :  { %v1057_v58 = vadd.f32 1e-05, %v1055_v52 }
 0x5ed   :  { %1748 = vrsqrt.f32 %v1057_v58 }
 0x5f7   :  { %v1749_v54 = vpop.eup %1748 }
 0x5f8   :  { %v1059_v59 = vmul.f32 %v1749_v54, %v1056_v29 }
 0x5fa   :  { %v1061_v60 = vmul.f32 %v1059_v59, %v972_v50  ;;  %v1067_v53 = vrot.slane %v1059_v59, %v2111_v10 }
 0x5fc   :  { %v1062_v61 = vsub.f32 %v1060_v51, %v1061_v60  ;;  %v1071_v62 = vmul.f32 %v2202_v16, %v1067_v53  ;;  %v1069_v63 = vmul.f32 %v1067_v53, %v2204_v18  ;;  %v1072_v2 = vmul.f32 %v2206_v19, %v1067_v53  ;;  %v1315_v19 = vld [vmem:[%s2267_s11] ss:$0 sm:$0xff]  ;;  %s1816_s11 = scalar_lea.vmem %s1265_s23, 1024 }
 0x5fd   :  { %v1070_v4 = vmul.f32 %v1067_v53, %v878_v24  ;;  %v1075_v1 = vmul.f32 %v1564_v33, %v1067_v53  ;;  %v1073_v5 = vmul.f32 %v1067_v53, %v891_v34  ;;  %v1076_v6 = vmul.f32 %v1565_v35, %v1067_v53  ;;  %p1817_p10 = scmp.ne.s32.totalorder %s1265_s23, %s1816_s11  ;;  %p1822_p12 = scmp.lt.s32.totalorder %s1816_s11, %s1816_s11 }
 0x5fe   :  { %v1081_v7 = vrot.slane %v1062_v61, %v2111_v10  ;;  %v1074_v3 = vmul.f32 %v1067_v53, %v894_v36 }
 0x5ff   :  { %p1823_p13 = por %p1822_p12, %p1821_p11 }
 0x600   :  { %v1085_v8 = vadd.f32 %v1081_v7, %v1071_v62  ;;  %v1083_v9 = vadd.f32 %v1081_v7, %v1069_v63  ;;  %v1086_v11 = vadd.f32 %v1081_v7, %v1072_v2  ;;  %v1084_v12 = vadd.f32 %v1081_v7, %v1070_v4 }
 0x601   :  { %v1089_v13 = vadd.f32 %v1081_v7, %v1075_v1  ;;  %v1087_v14 = vadd.f32 %v1081_v7, %v1073_v5  ;;  %v1090_v15 = vadd.f32 %v1081_v7, %v1076_v6  ;;  %v1088_v17 = vadd.f32 %v1081_v7, %v1074_v3  ;;  %p1824_p0 = pnand %p1823_p13, %p1817_p10 }
 0x602   :  { %v1093_v16 = vmax.f32 %v1085_v8, 0.0  ;;  %v1091_v20 = vmax.f32 %v1083_v9, 0.0  ;;  %v1094_v18 = vmax.f32 %v1086_v11, 0.0  ;;  %v1092_v21 = vmax.f32 %v1084_v12, 0.0 }
 0x603   :  { %v1097_v22 = vmax.f32 %v1089_v13, 0.0  ;;  %v1095_v24 = vmax.f32 %v1087_v14, 0.0  ;;  %v1098_v10 = vmax.f32 %v1090_v15, 0.0  ;;  %v1096_v25 = vmax.f32 %v1088_v17, 0.0 }
 0x604   :  { %v1230_v28 = vadd.f32 %v1622_v43, %v1093_v16  ;;  %v1228_v23 = vadd.f32 %v1197_v45, %v1091_v20  ;;  %v1231_v26 = vadd.f32 %v1623_v46, %v1094_v18  ;;  %v1229_v27 = vadd.f32 %v1200_v47, %v1092_v21 }
 0x605   :  { %v1234_v33 = vadd.f32 %v1626_v42, %v1097_v22  ;;  %v1232_v34 = vadd.f32 %v1213_v48, %v1095_v24  ;;  %v1235_v35 = vadd.f32 %v1627_v49, %v1098_v10  ;;  %v1233_v37 = vadd.f32 %v1216_v0, %v1096_v25 }
 0x606   :  { %v1245_v31 = vadd.f32 %v1315_v19, %v1230_v28  ;;  %v1243_v38 = vadd.f32 %v1315_v19, %v1228_v23  ;;  %v1246_v36 = vadd.f32 %v1315_v19, %v1231_v26  ;;  %v1244_v39 = vadd.f32 %v1315_v19, %v1229_v27 }
 0x607   :  { %v1249_v30 = vadd.f32 %v1315_v19, %v1234_v33  ;;  %v1247_v40 = vadd.f32 %v1315_v19, %v1232_v34  ;;  %v1250_v32 = vadd.f32 %v1315_v19, %v1235_v35  ;;  %v1248_v41 = vadd.f32 %v1315_v19, %v1233_v37 }
 0x608   :  { %1253 = vst [vmem:[#allocation9 + $0x10] sm:$0xff] %v1245_v31  ;;  %1251 = vst [vmem:[#allocation9] sm:$0xff] %v1243_v38 }
 0x609   :  { %1254 = vst [vmem:[#allocation9 + $0x18] sm:$0xff] %v1246_v36  ;;  %1252 = vst [vmem:[#allocation9 + $0x8] sm:$0xff] %v1244_v39 }
 0x60a   :  { %1257 = vst [vmem:[#allocation9 + $0x30] sm:$0xff] %v1249_v30  ;;  %1255 = vst [vmem:[#allocation9 + $0x20] sm:$0xff] %v1247_v40 }
 0x60b   :  { %1258 = vst [vmem:[#allocation9 + $0x38] sm:$0xff] %v1250_v32  ;;  %1256 = vst [vmem:[#allocation9 + $0x28] sm:$0xff] %v1248_v41 }
 0x60c   :  { %1827 = shalt.err (!%p1824_p0)
}
 0x60d   :  { %s1828_s10 = scalar_lea.hbm %s2268_s12, 1024 }
 0x60e   :  { %p1829_p1 = scmp.ne.s32.totalorder %s2268_s12, %s1828_s10  ;;  %p1832_p2 = scmp.lt.u32.totalorder %s1828_s10, %s2268_s12 }
 0x610   :  { %p1834_p3 = pnand %p1832_p2, %p1829_p1 }
 0x612   :  { %1837 = shalt.err (!%p1834_p3)
}
 0x613   :  { %s1854_s27 = smov 128   ;;  %s1855_s28 = smov 8  }
 0x614   :  { %1270 = dma.vmem_to_hbm [thread:$0]  %s1265_s23, 1024, %s2268_s12, [#allocation5], %s1854_s27, %s1854_s27, %s1855_s28  }
 0x615   :  { %1842 = dma.done.wait [#allocation5], 1024  }
 0x616   :  { %1843 = vsyncadd [#allocation5], 4294966272 }
 0x617   :  { %1274 = vsyncpa [#allocation4], 1 }
 0x618   :  { %1275 = vsyncpa [#allocation7], 1 }
 0x619   :  { %1276 = vsyncpa [#allocation5], 1 }

</bundles_post_ra>
